<compile_context>
chip_gen: v7x
topology: tpu7x:2x2x1
jax: 0.10.0
libtpu: 0.0.40
codegen_flags: <defaults>
</compile_context>

<pallas_src>
import functools

import jax
import jax.numpy as jnp
from jax.experimental import pallas as pl
from jax.experimental.pallas import tpu as pltpu


# ---------------------------------------------------------------------------
# Helpers
# ---------------------------------------------------------------------------
def _round_up(x, m):
    return (x + m - 1) // m * m


def _act_dtype_for_backend():
    """bf16 tanh/elementwise only where the VPU/EUP support it (v6e / v7x)."""
    try:
        kind = jax.devices()[0].device_kind.lower()
    except Exception:
        return jnp.float32
    return jnp.bfloat16 if ("v6" in kind or "v7" in kind) else jnp.float32


# ---------------------------------------------------------------------------
# Kernel: one fused MLP batch-tile
#   h1 = tanh(x @ W_in + b_in)        first layer (f32 matmul, tiny K)
#   h2 = tanh(h1 @ W1 + b1)           trunk (bf16 operands, f32 accumulation)
#   o  = sum(h2 * w2_row, -1) + b2    N=1 projection on VPU (mul) + XLU (reduce)
# ---------------------------------------------------------------------------
def _disc_kernel(x_ref, w_in_ref, b_in_ref, w1_ref, b1_ref, w2_ref, b2_ref,
                 o_ref, *, act_dtype):
    h = jnp.dot(x_ref[...], w_in_ref[...],
                preferred_element_type=jnp.float32) + b_in_ref[...]
    h = jnp.tanh(h.astype(act_dtype))

    pre = jnp.dot(h.astype(jnp.bfloat16), w1_ref[...],
                  preferred_element_type=jnp.float32) + b1_ref[...]
    h = jnp.tanh(pre.astype(act_dtype))

    # Final N=1 projection stays off the MXU (avoids a 1-column matmul drain).
    o_ref[...] = (jnp.sum(h.astype(jnp.float32) * w2_ref[...],
                          axis=-1, keepdims=True) + b2_ref[...])


# ---------------------------------------------------------------------------
# Wrapper
# ---------------------------------------------------------------------------
def discriminator_sa_forward(params, x, state_dim, action_dim, *, tb=1024):
    """Reproduces Discriminator_SA.forward(input). x: [B, state_dim(+action_dim)]."""
    B, feat = x.shape
    x = x.astype(jnp.float32)
    hidden = params["w1"].shape[0]

    # --- fuse the input trunk(s) into a single first layer ------------------
    if feat == state_dim:
        # state-only path (PyTorch: input.shape[1] == self.state_dim)
        w_in = params["ws"].astype(jnp.float32)                  # (state_dim, hidden)
        b_in = params["bs"].astype(jnp.float32)                  # (1, hidden)
    else:
        assert feat == state_dim + action_dim, "input width mismatch"
        sh = params["ws"].shape[1]                               # hidden // 2
        w_in = jnp.zeros((feat, hidden), jnp.float32)
        w_in = w_in.at[:state_dim, :sh].set(params["ws"].astype(jnp.float32))
        w_in = w_in.at[state_dim:, sh:].set(params["wa"].astype(jnp.float32))
        b_in = jnp.concatenate([params["bs"], params["ba"]],
                               axis=1).astype(jnp.float32)       # (1, hidden)

    w1 = params["w1"].astype(jnp.bfloat16)                        # (hidden, hidden)
    b1 = params["b1"].astype(jnp.float32)                         # (1, hidden)
    w2 = params["w2"].astype(jnp.float32).T                       # (1, hidden)
    b2 = params["b2"].astype(jnp.float32)                         # (1, 1)

    # --- batch tiling --------------------------------------------------------
    # ceil(B/2): >=2 grid tiles whenever B > 16 so the v7x megacore is used;
    # rounded to a 16-row sublane multiple; capped at `tb` rows (1024 keeps the
    # per-tile footprint comfortably under the v5e 16 MiB scoped-VMEM default).
    TB = min(tb, max(16, _round_up((max(B, 1) + 1) // 2, 16)))
    B_pad = _round_up(max(B, 1), TB)
    if B_pad != B:
        x = jnp.pad(x, ((0, B_pad - B), (0, 0)))
    grid = (B_pad // TB,)

    kernel = functools.partial(_disc_kernel, act_dtype=_act_dtype_for_backend())

    # Weights / biases: same block every grid step -> stay resident in VMEM.
    resident = [pl.BlockSpec(a.shape, lambda i: (0, 0))
                for a in (w_in, b_in, w1, b1, w2, b2)]

    out = pl.pallas_call(
        kernel,
        grid=grid,
        in_specs=[pl.BlockSpec((TB, feat), lambda i: (i, 0))] + resident,
        out_specs=pl.BlockSpec((TB, 1), lambda i: (i, 0)),
        out_shape=jax.ShapeDtypeStruct((B_pad, 1), jnp.float32),
        compiler_params=pltpu.CompilerParams(
            dimension_semantics=("parallel",),
            vmem_limit_bytes=32 * 1024 * 1024),
    )(x, w_in, b_in, w1, b1, w2, b2)
    return out[:B] if B_pad != B else out


# ---------------------------------------------------------------------------
# Deterministic parameter init (mirrors nn.Linear default uniform init)
# ---------------------------------------------------------------------------
def init_params(key, state_dim, action_dim, hidden_dim=256):
    state_hidden = hidden_dim if action_dim == 0 else hidden_dim // 2
    action_in = 1 if action_dim == 0 else action_dim
    keys = jax.random.split(key, 8)

    def linear(kw, kb, fan_in, fan_out):
        bound = 1.0 / float(fan_in) ** 0.5
        w = jax.random.uniform(kw, (fan_in, fan_out), jnp.float32, -bound, bound)
        b = jax.random.uniform(kb, (1, fan_out), jnp.float32, -bound, bound)
        return w, b

    ws, bs = linear(keys[0], keys[1], state_dim, state_hidden)      # state_trunk
    wa, ba = linear(keys[2], keys[3], action_in, hidden_dim // 2)   # action_trunk
    w1, b1 = linear(keys[4], keys[5], hidden_dim, hidden_dim)       # trunk[0]
    w2, b2 = linear(keys[6], keys[7], hidden_dim, 1)                # trunk[2]
    return dict(ws=ws, bs=bs, wa=wa, ba=ba, w1=w1, b1=b1, w2=w2, b2=b2)


# ---------------------------------------------------------------------------
# Plain-JAX references (f32)
# ---------------------------------------------------------------------------
def _reference_forward(params, x, state_dim):
    state = x[:, :state_dim]
    action = x[:, state_dim:]
    hs = jnp.tanh(state @ params["ws"] + params["bs"])
    ha = jnp.tanh(action @ params["wa"] + params["ba"])
    h = jnp.concatenate([hs, ha], axis=1)
    h = jnp.tanh(h @ params["w1"] + params["b1"])
    return h @ params["w2"] + params["b2"]


def _reference_forward_state_only(params, x):
    h = jnp.tanh(x @ params["ws"] + params["bs"])
    h = jnp.tanh(h @ params["w1"] + params["b1"])
    return h @ params["w2"] + params["b2"]


# ---------------------------------------------------------------------------
if __name__ == "__main__":
    state_dim = 16
    action_dim = 8
    hidden_dim = 32
    batch = 8

    key = jax.random.PRNGKey(0)
    k_params, k_x, k_x2, k_x3 = jax.random.split(key, 4)

    # ---- concat path: input = [state | action] ----
    params = init_params(k_params, state_dim, action_dim, hidden_dim)
    x = jax.random.normal(k_x, (batch, state_dim + action_dim), jnp.float32)
    out = jax.block_until_ready(
        discriminator_sa_forward(params, x, state_dim, action_dim))
    ref = _reference_forward(params, x, state_dim)
    assert out.shape == (batch, 1)
    # bf16 trunk operands / bf16 tanh on v6e+, f32 accumulation -> loose tol
    assert jnp.allclose(out, ref, atol=5e-2, rtol=5e-2), "mismatch (concat path)"

    # ---- state-only path: action_dim == 0 ----
    params_s = init_params(k_params, state_dim, 0, hidden_dim)
    xs = jax.random.normal(k_x2, (batch, state_dim), jnp.float32)
    out_s = jax.block_until_ready(
        discriminator_sa_forward(params_s, xs, state_dim, 0))
    ref_s = _reference_forward_state_only(params_s, xs)
    assert out_s.shape == (batch, 1)
    assert jnp.allclose(out_s, ref_s, atol=5e-2, rtol=5e-2), "mismatch (state path)"

    # ---- multi-tile grid + padding (exercises >=2 grid steps, row padding) ----
    xb = jax.random.normal(k_x3, (40, state_dim + action_dim), jnp.float32)
    out_b = jax.block_until_ready(
        discriminator_sa_forward(params, xb, state_dim, action_dim))
    ref_b = _reference_forward(params, xb, state_dim)
    assert out_b.shape == (40, 1)
    assert jnp.allclose(out_b, ref_b, atol=5e-2, rtol=5e-2), "mismatch (multi-tile)"

    print("KERNEL_OK")
</pallas_src>

<mosaic_0001>
module attributes {stable_mosaic.version = 11 : i64} {
  func.func @_disc_kernel(%arg0: i32, %arg1: memref<16x24xf32, #tpu.memory_space<vmem>>, %arg2: memref<24x32xf32, #tpu.memory_space<vmem>>, %arg3: memref<1x32xf32, #tpu.memory_space<vmem>>, %arg4: memref<32x32xbf16, #tpu.memory_space<vmem>>, %arg5: memref<1x32xf32, #tpu.memory_space<vmem>>, %arg6: memref<1x32xf32, #tpu.memory_space<vmem>>, %arg7: memref<1x1xf32, #tpu.memory_space<vmem>>, %arg8: memref<16x1xf32, #tpu.memory_space<vmem>>) attributes {dimension_semantics = [#tpu.dimension_semantics<parallel>], iteration_bounds = array<i64: 1>, scalar_prefetch = 0 : i64, scratch_operands = 0 : i64, tpu.core_type = #tpu.core_type<tc>, window_params = [{transform_indices = @transform_0, window_bounds = array<i64: 16, 24>}, {pipeline_mode = #tpu.pipeline_mode<synchronous>, transform_indices = @transform_1, window_bounds = array<i64: 24, 32>}, {pipeline_mode = #tpu.pipeline_mode<synchronous>, transform_indices = @transform_2, window_bounds = array<i64: 1, 32>}, {pipeline_mode = #tpu.pipeline_mode<synchronous>, transform_indices = @transform_3, window_bounds = array<i64: 32, 32>}, {pipeline_mode = #tpu.pipeline_mode<synchronous>, transform_indices = @transform_4, window_bounds = array<i64: 1, 32>}, {pipeline_mode = #tpu.pipeline_mode<synchronous>, transform_indices = @transform_5, window_bounds = array<i64: 1, 32>}, {pipeline_mode = #tpu.pipeline_mode<synchronous>, transform_indices = @transform_6, window_bounds = array<i64: 1, 1>}, {transform_indices = @transform_7, window_bounds = array<i64: 16, 1>}]} {
    %c0 = arith.constant 0 : index
    %c0_0 = arith.constant 0 : index
    %0 = vector.load %arg1[%c0, %c0_0] : memref<16x24xf32, #tpu.memory_space<vmem>>, vector<16x24xf32>
    %c0_1 = arith.constant 0 : index
    %c0_2 = arith.constant 0 : index
    %1 = vector.load %arg2[%c0_1, %c0_2] : memref<24x32xf32, #tpu.memory_space<vmem>>, vector<24x32xf32>
    %cst = arith.constant dense<0.000000e+00> : vector<16x32xf32>
    %2 = tpu.matmul %0, %1, %cst {dimension_numbers = #tpu.dot_dimension_numbers<[1], [0], [0], [1], [0, 0, 1, 1], [], []>} : vector<16x24xf32>, vector<24x32xf32>, vector<16x32xf32> -> vector<16x32xf32>
    %c0_3 = arith.constant 0 : index
    %c0_4 = arith.constant 0 : index
    %3 = vector.load %arg3[%c0_3, %c0_4] : memref<1x32xf32, #tpu.memory_space<vmem>>, vector<1x32xf32>
    %4 = vector.broadcast %3 : vector<1x32xf32> to vector<16x32xf32>
    %5 = arith.addf %2, %4 : vector<16x32xf32>
    %6 = math.tanh %5 : vector<16x32xf32>
    %7 = arith.truncf %6 : vector<16x32xf32> to vector<16x32xbf16>
    %c0_5 = arith.constant 0 : index
    %c0_6 = arith.constant 0 : index
    %8 = vector.load %arg4[%c0_5, %c0_6] : memref<32x32xbf16, #tpu.memory_space<vmem>>, vector<32x32xbf16>
    %cst_7 = arith.constant dense<0.000000e+00> : vector<16x32xf32>
    %9 = tpu.matmul %7, %8, %cst_7 {dimension_numbers = #tpu.dot_dimension_numbers<[1], [0], [0], [1], [0, 0, 1, 1], [], []>} : vector<16x32xbf16>, vector<32x32xbf16>, vector<16x32xf32> -> vector<16x32xf32>
    %c0_8 = arith.constant 0 : index
    %c0_9 = arith.constant 0 : index
    %10 = vector.load %arg5[%c0_8, %c0_9] : memref<1x32xf32, #tpu.memory_space<vmem>>, vector<1x32xf32>
    %11 = vector.broadcast %10 : vector<1x32xf32> to vector<16x32xf32>
    %12 = arith.addf %9, %11 : vector<16x32xf32>
    %13 = math.tanh %12 : vector<16x32xf32>
    %c0_10 = arith.constant 0 : index
    %c0_11 = arith.constant 0 : index
    %14 = vector.load %arg6[%c0_10, %c0_11] : memref<1x32xf32, #tpu.memory_space<vmem>>, vector<1x32xf32>
    %15 = vector.broadcast %14 : vector<1x32xf32> to vector<16x32xf32>
    %16 = arith.mulf %13, %15 : vector<16x32xf32>
    %cst_12 = arith.constant dense<0.000000e+00> : vector<16xf32>
    %17 = vector.multi_reduction <add>, %16, %cst_12 [1] : vector<16x32xf32> to vector<16xf32>
    %18 = vector.shape_cast %17 : vector<16xf32> to vector<16x1xf32>
    %c0_13 = arith.constant 0 : index
    %c0_14 = arith.constant 0 : index
    %19 = vector.load %arg7[%c0_13, %c0_14] : memref<1x1xf32, #tpu.memory_space<vmem>>, vector<1x1xf32>
    %20 = vector.broadcast %19 : vector<1x1xf32> to vector<16x1xf32>
    %21 = arith.addf %18, %20 : vector<16x1xf32>
    %c0_15 = arith.constant 0 : index
    %c0_16 = arith.constant 0 : index
    %22 = vector.load %arg8[%c0_15, %c0_16] : memref<16x1xf32, #tpu.memory_space<vmem>>, vector<16x1xf32>
    tpu.vector_store %arg8[%c0_15, %c0_16], %21 {strides = array<i32>} : memref<16x1xf32, #tpu.memory_space<vmem>>, vector<16x1xf32>,
    return
  }
  func.func @transform_0(%arg0: i32) -> (i32, i32) {
    %c0_i32 = arith.constant 0 : i32
    %c0_i32_0 = arith.constant 0 : i32
    return %arg0, %c0_i32 : i32, i32
  }
  func.func @transform_1(%arg0: i32) -> (i32, i32) {
    %c0_i32 = arith.constant 0 : i32
    %c0_i32_0 = arith.constant 0 : i32
    %c0_i32_1 = arith.constant 0 : i32
    return %c0_i32, %c0_i32_0 : i32, i32
  }
  func.func @transform_2(%arg0: i32) -> (i32, i32) {
    %c0_i32 = arith.constant 0 : i32
    %c0_i32_0 = arith.constant 0 : i32
    %c0_i32_1 = arith.constant 0 : i32
    return %c0_i32, %c0_i32_0 : i32, i32
  }
  func.func @transform_3(%arg0: i32) -> (i32, i32) {
    %c0_i32 = arith.constant 0 : i32
    %c0_i32_0 = arith.constant 0 : i32
    %c0_i32_1 = arith.constant 0 : i32
    return %c0_i32, %c0_i32_0 : i32, i32
  }
  func.func @transform_4(%arg0: i32) -> (i32, i32) {
    %c0_i32 = arith.constant 0 : i32
    %c0_i32_0 = arith.constant 0 : i32
    %c0_i32_1 = arith.constant 0 : i32
    return %c0_i32, %c0_i32_0 : i32, i32
  }
  func.func @transform_5(%arg0: i32) -> (i32, i32) {
    %c0_i32 = arith.constant 0 : i32
    %c0_i32_0 = arith.constant 0 : i32
    %c0_i32_1 = arith.constant 0 : i32
    return %c0_i32, %c0_i32_0 : i32, i32
  }
  func.func @transform_6(%arg0: i32) -> (i32, i32) {
    %c0_i32 = arith.constant 0 : i32
    %c0_i32_0 = arith.constant 0 : i32
    %c0_i32_1 = arith.constant 0 : i32
    return %c0_i32, %c0_i32_0 : i32, i32
  }
  func.func @transform_7(%arg0: i32) -> (i32, i32) {
    %c0_i32 = arith.constant 0 : i32
    %c0_i32_0 = arith.constant 0 : i32
    return %arg0, %c0_i32 : i32, i32
  }
}

</mosaic_0001>

<bundles_post_ra>
// kernel: tpu_custom_call.1
= control target key start
LH: loop header
LB: loop body
LE: loop exit
PB: predicated region body
PF: predicated region fallthrough
CT: control target
= control target key end

     0   :  { %s510_s0 = inlined_call_operand.hbm [shape: f32[16,24], index: 0, kind: input, shape index: {}]   ;;  %s511_s1 = inlined_call_operand.hbm [shape: f32[24,32], index: 1, kind: input, shape index: {}]   ;;  %s512_s2 = inlined_call_operand.vmem [shape: f32[1,32], index: 2, kind: input, shape index: {}]   ;;  %s513_s3 = inlined_call_operand.hbm [shape: bf16[32,32], index: 3, kind: input, shape index: {}]   ;;  %s514_s4 = inlined_call_operand.vmem [shape: f32[1,32], index: 4, kind: input, shape index: {}]   ;;  %s515_s5 = inlined_call_operand.vmem [shape: f32[1,32], index: 5, kind: input, shape index: {}]   ;;  %s516_s6 = inlined_call_operand.<no memory space> [shape: f32[1,1], index: 6, kind: input, shape index: {}]   ;;  %s517_s7 = inlined_call_operand.vmem [shape: f32[16,1], index: 7, kind: output, shape index: {}]  }
   0x1   :  { %v12_v0 = vstv %s516_s6 }
   0x2   :  { %13 = vst [vmem:[#allocation2] sm:$0x1] %v12_v0 }
   0x3   :  { %14 = vsyncpa [#allocation4], 0 }
   0x4   :  { %15 = vsyncpa [#allocation6], 0  ;;  %s397_s26 = smov [#allocation5]   ;;  %s398_s28 = smov [#allocation3]  }
   0x5   :  { %s33_s27 = sshll.u32 %s397_s26, 4  ;;  %s21_s29 = sshll.u32 %s398_s28, 4  ;;  %s34_s27 = int_to_ptr.vmem [resolvable:$true] %s33_s27  ;;  %s449_s29 = int_to_ptr.vmem [resolvable:$true] %s21_s29 }
   0x6   :  { %s327_s9 = scalar_lea.hbm %s511_s1, 384 }
   0x7   :  { %p328_p0 = scmp.ne.s32.totalorder %s511_s1, %s327_s9  ;;  %p331_p1 = scmp.lt.u32.totalorder %s327_s9, %s511_s1 }
   0x9   :  { %p333_p2 = pnand %p331_p1, %p328_p0 }
   0xb   :  { %336 = shalt.err (!%p333_p2)
}
   0xc   :  { %s337_s13 = scalar_lea.vmem %s34_s27, 384  ;;  %p342_p4 = scmp.lt.s32.totalorder %s34_s27, %s34_s27 }
   0xd   :  { %p338_p3 = scmp.ne.s32.totalorder %s34_s27, %s337_s13  ;;  %p343_p5 = scmp.lt.s32.totalorder %s337_s13, %s337_s13 }
   0xf   :  { %p344_p6 = por %p343_p5, %p342_p4 }
  0x11   :  { %p345_p7 = pnand %p344_p6, %p338_p3 }
  0x13   :  { %348 = shalt.err (!%p345_p7)
}
  0x14   :  { %s399_s14 = smov 128   ;;  %s400_s15 = smov 8  }
  0x15   :  { %39 = dma.hbm_to_vmem [thread:$0]  %s511_s1, 384, %s34_s27, [#allocation6], %s399_s14, %s399_s14, %s400_s15  }
  0x16   :  { %s349_s20 = scalar_lea.hbm %s510_s0, 256 }
  0x17   :  { %p350_p8 = scmp.ne.s32.totalorder %s510_s0, %s349_s20  ;;  %p353_p9 = scmp.lt.u32.totalorder %s349_s20, %s510_s0 }
  0x19   :  { %p355_p10 = pnand %p353_p9, %p350_p8 }
  0x1b   :  { %358 = shalt.err (!%p355_p10)
}
  0x1c   :  { %s359_s25 = scalar_lea.vmem %s449_s29, 256  ;;  %p364_p12 = scmp.lt.s32.totalorder %s449_s29, %s449_s29 }
  0x1d   :  { %p360_p11 = scmp.ne.s32.totalorder %s449_s29, %s359_s25  ;;  %p365_p13 = scmp.lt.s32.totalorder %s359_s25, %s359_s25 }
  0x1f   :  { %p366_p0 = por %p365_p13, %p364_p12 }
  0x21   :  { %p367_p1 = pnand %p366_p0, %p360_p11 }
  0x23   :  { %370 = shalt.err (!%p367_p1)
}
  0x24   :  { %27 = dma.hbm_to_vmem [thread:$0]  %s510_s0, 256, %s449_s29, [#allocation4], %s399_s14, %s399_s14, %s400_s15  }
  0x25   :  { %s401_s27 = smov [#allocation7]   ;;  %s371_s9 = scalar_lea.hbm %s513_s3, 256 }
  0x26   :  { %s47_s28 = sshll.u32 %s401_s27, 4  ;;  %p372_p2 = scmp.ne.s32.totalorder %s513_s3, %s371_s9  ;;  %s48_s28 = int_to_ptr.vmem [resolvable:$true] %s47_s28 }
  0x27   :  { %p375_p3 = scmp.lt.u32.totalorder %s371_s9, %s513_s3 }
  0x29   :  { %p377_p4 = pnand %p375_p3, %p372_p2 }
  0x2b   :  { %380 = shalt.err (!%p377_p4)
}
  0x2c   :  { %s381_s13 = scalar_lea.vmem %s48_s28, 256  ;;  %p386_p6 = scmp.lt.s32.totalorder %s48_s28, %s48_s28 }
  0x2d   :  { %p382_p5 = scmp.ne.s32.totalorder %s48_s28, %s381_s13  ;;  %p387_p7 = scmp.lt.s32.totalorder %s381_s13, %s381_s13 }
  0x2f   :  { %p388_p8 = por %p387_p7, %p386_p6 }
  0x31   :  { %p389_p9 = pnand %p388_p8, %p382_p5 }
  0x33   :  { %392 = shalt.err (!%p389_p9)
}
  0x34   :  { %s402_s0 = smov 64   ;;  %s403_s29 = smov 4  }
  0x35   :  { %53 = dma.hbm_to_vmem [thread:$0]  %s513_s3, 256, %s48_s28, [#allocation6], %s402_s0, %s402_s0, %s403_s29  }
  0x36   :  { %393 = dma.done.wait [#allocation4], 256  }
  0x37   :  { %394 = vsyncadd [#allocation4], 4294967040 }
  0x38   :  { %395 = dma.done.wait [#allocation6], 640  }
  0x39   :  { %396 = vsyncadd [#allocation6], 4294966656  ;;  %vm82_vm0 = vcmask 195584   ;;  %v72_v1 = vld [vmem:[#allocation5] sm:$0xff]  ;;  %v73_v2 = vld [vmem:[#allocation5 + $0x8] sm:$0xff]  ;;  %v404_v8 = vmov 0.0  }
  0x3a   :  { %v304_v3 = vpack.c.bf16 %v73_v2, %v72_v1  ;;  %v74_v4 = vld [vmem:[#allocation5 + $0x10] sm:$0xff]  ;;  %v71_v6 = vld [vmem:[#allocation3 + $0x8] sm:$0xff]  ;;  %296 = vmatprep.subr.bf16.mxu1 %v404_v8  ;;  %vm405_vm1 = vmmov 0   ;;  %v318_v9 = vld [vmem:[#allocation7 + $0x8] sm:$0xff]   ;;  %vm190_vm2 = vcmask 261120   ;;  %vm261_vm3 = vcmask 7168  }
  0x3b   :  { %v70_v5 = vld [vmem:[#allocation3] sm:$0xff]  ;;  %v317_v7 = vld [vmem:[#allocation7] sm:$0xff]   ;;  %300 = vmatprep.mubr.msk.bf16.mxu1 %vm405_vm1, %v404_v8  ;;  %v270_v10 = vld [vmem:[%s512_s2] ss:$0 sm:$0xff] }
  0x3c   :  { %293 = vmatprep.mubr.msk.f32.mxu0 %vm82_vm0, %v70_v5  ;;  %305 = vmatprep.subr.bf16.mxu0 %v304_v3  ;;  %v273_v18 = vld [vmem:[%s514_s4] ss:$0 sm:$0xff] }
  0x3d   :  { %307 = vmatpush3.bf16.msra.mxu0 %v304_v3  ;;  %297 = vmatpush3.bf16.msra.mxu1 %v317_v7  ;;  %v277_v25 = vld [vmem:[%s515_s5] ss:$0 sm:$0xff] }
  0x3e   :  { %291 = vmatprep.subr.mxu0 %v74_v4  ;;  %298 = vmatprep.subr.bf16.mxu1 %v404_v8  ;;  %v278_v32 = vld [vmem:[#allocation2] ss:$0 sm:$0xff] }
  0x41   :  { %292 = vmatpush3.msra.mxu0 %v74_v4  ;;  %299 = vmatpush3.bf16.msra.mxu1 %v318_v9 }
  0x42   :  { %294 = vmatmul.mubr.msk.f32.vlgmr.msra.gmra.mrb[0].mxu0 %vm82_vm0, %v71_v6 }
 0x115   :  { %v295_v11 = vpop.f32.mrb[0].mxu0 }
 0x116   :  { %v161_v12 = vadd.f32 %v295_v11, %v270_v10  ;;  %v155_v13 = vpop.f32.mrb[1].mxu0 }
 0x117   :  { %v156_v14 = vadd.f32 %v270_v10, %v155_v13 }
 0x118   :  { %319 = vtanh.f32 %v161_v12 }
 0x119   :  { %321 = vtanh.f32 %v156_v14 }
 0x122   :  { %v320_v15 = vpop.eup %319 }
 0x123   :  { %v322_v16 = vpop.eup %321 }
 0x124   :  { %v166_v17 = vpack.c.bf16 %v320_v15, %v322_v16 }
 0x126   :  { %301 = vmatmul.mubr.msk.bf16.vlgmr.msra.gmra.mrb[0].mxu1 %vm190_vm2, %v166_v17 }
 0x1f9   :  { %v228_v19 = vpop.f32.mrb[0].mxu1 }
 0x1fa   :  { %v229_v20 = vadd.f32 %v273_v18, %v228_v19  ;;  %v302_v21 = vpop.f32.mrb[1].mxu1 }
 0x1fb   :  { %v231_v22 = vpop.f32.mrb[2].mxu1 }
 0x1fc   :  { %323 = vtanh.f32 %v229_v20  ;;  %v232_v23 = vadd.f32 %v273_v18, %v231_v22  ;;  %v303_v24 = vpop.f32.mrb[3].mxu1 }
 0x1fe   :  { %325 = vtanh.f32 %v232_v23 }
 0x206   :  { %v324_v26 = vpop.eup %323 }
 0x207   :  { %v244_v27 = vmul.f32 %v324_v26, %v277_v25 }
 0x208   :  { %v326_v28 = vpop.eup %325 }
 0x209   :  { %v246_v29 = vsel %vm190_vm2, %v244_v27, 0.0  ;;  %v245_v30 = vmul.f32 %v326_v28, %v277_v25 }
 0x20a   :  { %247 = vadd.xlane.f32.xlu0 %v246_v29 }
 0x20b   :  { %v249_v31 = vsel %vm190_vm2, %v245_v30, 0.0 }
 0x20e   :  { %250 = vadd.xlane.f32.xlu0 %v249_v31 }
 0x297   :  { %v248_v33 = vpop.xlane.xlu0 %247 }
 0x298   :  { %v259_v34 = vadd.f32 %v278_v32, %v248_v33 }
 0x29a   :  { %262 = vst.msk [vmem:[%s517_s7] sm:$0xff] %vm261_vm3, %v259_v34 }
 0x29b   :  { %v251_v35 = vpop.xlane.xlu0 %250 }
 0x29c   :  { %v260_v36 = vadd.f32 %v278_v32, %v251_v35 }
 0x29e   :  { %263 = vst.msk [vmem:[%s517_s7 + $0x8] sm:$0xff] %vm261_vm3, %v260_v36 }
 0x29f   :  { %268 = vsyncpa [#allocation4], 1 }
 0x2a0   :  { %269 = vsyncpa [#allocation6], 1 }

</bundles_post_ra>
